<compile_context>
chip_gen: v5e
topology: v5e:2x2
jax: 0.10.0
libtpu: 0.0.40
codegen_flags: <defaults>
</compile_context>

<pallas_src>
import jax
import jax.numpy as jnp
from jax.experimental import pallas as pl
from jax.experimental.pallas import tpu as pltpu


# -----------------------------------------------------------------------------
# Fused rollout kernel: one grid step == one TGCNCell.forward timestep.
# -----------------------------------------------------------------------------
def _tgcn_rollout_kernel(g1x_ref, g2x_ref, h0_ref, adjru_ref, adj_ref,
                         w1hl_ref, w1hr_ref, w2h_ref,
                         hseq_ref, h_acc, y_stack):
    """Refs for grid step t:

      g1x_ref   (1, 2n, H) f32  precomputed A_ru @ (x_t @ W1x) + b1 (gate-split layout)
      g2x_ref   (1, n, H)  f32  precomputed A_hat @ (x_t @ W2x) + b2
      h0_ref    (n, H)     f32  initial hidden state (resident; read only at t == 0)
      adjru_ref (2n, 2n)   f32  gate-split block adjacency operator (resident)
      adj_ref   (n, n)     f32  A_hat (resident)
      w1hl_ref  (H, H)     f32  conv1 h-path weight, r column-half (resident)
      w1hr_ref  (H, H)     f32  conv1 h-path weight, u column-half (resident)
      w2h_ref   (H, H)     f32  conv2 h-path weight (resident)
      hseq_ref  (1, n, H)  f32  output: hidden state after step t
      h_acc     (n, H)     f32  VMEM scratch: carried hidden state
      y_stack   (2n, H)    f32  VMEM scratch: sublane-stacked [h@W1h_l ; h@W1h_r]
    """
    n = h0_ref.shape[0]

    @pl.when(pl.program_id(0) == 0)
    def _init():
        h_acc[...] = h0_ref[...]

    h = h_acc[...]

    # graph_conv1 (reset/update gates), h-dependent part only; the x part, its
    # adjacency aggregation and the bias are pre-folded into g1x.  The two split
    # matmuls write directly into the stacked scratch (no lane concat/reshape).
    y_stack[:n, :] = jnp.dot(h, w1hl_ref[...], preferred_element_type=jnp.float32)
    y_stack[n:, :] = jnp.dot(h, w1hr_ref[...], preferred_element_type=jnp.float32)
    ru = jax.nn.sigmoid(
        g1x_ref[0]
        + jnp.dot(adjru_ref[...], y_stack[...],
                  preferred_element_type=jnp.float32))          # (2n, H)
    r = ru[:n]          # == torch's first chunk  (reset gate)
    u = ru[n:]          # == torch's second chunk (update gate)

    # graph_conv2 (candidate state), h-dependent part only.
    y2h = jnp.dot(r * h, w2h_ref[...], preferred_element_type=jnp.float32)
    c = jnp.tanh(
        g2x_ref[0]
        + jnp.dot(adj_ref[...], y2h, preferred_element_type=jnp.float32))

    h_new = u * h + (1.0 - u) * c
    h_acc[...] = h_new
    hseq_ref[0] = h_new


# -----------------------------------------------------------------------------
# Host-side (per-sequence, hoisted) preprocessing.
# -----------------------------------------------------------------------------
def gcn_norm_dense(edge_index, num_nodes):
    """Dense A_hat = D^-1/2 (A + I) D^-1/2 with A[dst, src] = #edges(src->dst)."""
    src = edge_index[0]
    dst = edge_index[1]
    a = jnp.zeros((num_nodes, num_nodes), jnp.float32).at[dst, src].add(1.0)
    a = a + jnp.eye(num_nodes, dtype=jnp.float32)          # add_self_loops
    deg = a.sum(axis=1)
    dinv = jnp.where(deg > 0.0, 1.0 / jnp.sqrt(deg), 0.0)
    return a * dinv[:, None] * dinv[None, :]


def prepare_tgcn_operators(edge_index, num_nodes, hidden_size, params):
    """Build all per-sequence constants ONCE (hoisted out of the recurrence).

    torch's `ru.reshape(-1).chunk(2)` gate split is the row-major identity
        ru(n, 2H).reshape(2n, H)[a2, b] == ru[a2 // 2, (a2 % 2) * H + b]
    (valid for any n, even or odd), so it is folded into a single (2n, 2n)
    block adjacency operator
        A_ru[a2, (a2 % 2) * n + s] = A_hat[a2 // 2, s]
    acting on [Y_l ; Y_r] stacked along the node (sublane) axis.  Rows [:n] of
    sigmoid(A_ru @ Y_stack + b_ru) are exactly r and rows [n:] exactly u.
    """
    w1, w2, b1, b2 = params           # w1: (F+H, 2H), w2: (F+H, H)  (rows = [x | h])
    n, H = num_nodes, hidden_size
    F = w1.shape[0] - H
    adj = gcn_norm_dense(edge_index, n)                    # (n, n)

    a2 = jnp.arange(2 * n)
    rows = a2 // 2
    par = a2 % 2
    cols = par[:, None] * n + jnp.arange(n)[None, :]       # (2n, n)
    adjru = (jnp.zeros((2 * n, 2 * n), jnp.float32)
             .at[a2[:, None], cols].set(adj[rows]))        # (2n, 2n)
    b_ru = b1.reshape(2, H)[par]                           # (2n, H) bias, split layout

    return dict(
        adj=adj, adjru=adjru, b_ru=b_ru,
        w1x=w1[:F], w1h_l=w1[F:, :H], w1h_r=w1[F:, H:],
        w2x=w2[:F], w2h=w2[F:],
        b2=b2,
    )


def tgcn_rollout(xs, h0, ops):
    """Run T TGCNCell steps fused into a single pallas_call.

    xs: (T, n, F) f32, h0: (n, H) f32.  Returns hseq (T, n, H): the hidden state
    after each step (hseq[-1] is the final state).
    """
    T, n, _ = xs.shape
    H = h0.shape[1]
    hp = jax.lax.Precision.HIGHEST

    # Hoisted, h-independent x path for ALL timesteps: batched lane-dense matmuls
    # with the adjacency aggregation and biases folded in, laid out in the
    # gate-split order expected by the kernel.
    y1x = jnp.einsum("tnf,fg->tng", xs, ops["w1x"], precision=hp)        # (T, n, 2H)
    g1x = jnp.einsum("mn,tng->tmg", ops["adj"], y1x, precision=hp)       # (T, n, 2H)
    g1x = g1x.reshape(T, 2 * n, H) + ops["b_ru"][None]                   # (T, 2n, H)
    y2x = jnp.einsum("tnf,fh->tnh", xs, ops["w2x"], precision=hp)        # (T, n, H)
    g2x = (jnp.einsum("mn,tnh->tmh", ops["adj"], y2x, precision=hp)
           + ops["b2"][None, None, :])                                   # (T, n, H)

    def const(shape):
        return pl.BlockSpec(shape, lambda t: (0,) * len(shape))

    return pl.pallas_call(
        _tgcn_rollout_kernel,
        out_shape=jax.ShapeDtypeStruct((T, n, H), jnp.float32),
        grid=(T,),
        in_specs=[
            pl.BlockSpec((1, 2 * n, H), lambda t: (t, 0, 0)),   # g1x (time-indexed)
            pl.BlockSpec((1, n, H), lambda t: (t, 0, 0)),       # g2x (time-indexed)
            const((n, H)),             # h0       (resident)
            const((2 * n, 2 * n)),     # adjru    (resident)
            const((n, n)),             # adj      (resident)
            const((H, H)),             # w1h_l    (resident)
            const((H, H)),             # w1h_r    (resident)
            const((H, H)),             # w2h      (resident)
        ],
        out_specs=pl.BlockSpec((1, n, H), lambda t: (t, 0, 0)),
        scratch_shapes=[pltpu.VMEM((n, H), jnp.float32),        # carried hidden state
                        pltpu.VMEM((2 * n, H), jnp.float32)],   # stacked conv1 h-path
        compiler_params=pltpu.CompilerParams(
            dimension_semantics=("arbitrary",)),                # h carries across time
    )(g1x, g2x, h0, ops["adjru"], ops["adj"],
      ops["w1h_l"], ops["w1h_r"], ops["w2h"])


def tgcn_cell_forward(x, hidden_state, ops):
    """One module-faithful TGCNCell.forward step (a T == 1 rollout)."""
    return tgcn_rollout(x[None], hidden_state, ops)[0]


# -----------------------------------------------------------------------------
# Synthetic parameters (mirror GCNConv shapes / init of the module).
# -----------------------------------------------------------------------------
def make_params(key, input_size, hidden_size):
    """graph_conv1: 2H outputs, bias=1.0 (reset_parameters); graph_conv2: H outputs,
    bias=0.  Weights stored transposed [in_ch, out_ch]; row order matches concat
    [x | h]."""
    k1, k2 = jax.random.split(key)
    in_ch = input_size + hidden_size
    w1 = jax.random.normal(k1, (in_ch, 2 * hidden_size), jnp.float32) * 0.1
    w2 = jax.random.normal(k2, (in_ch, hidden_size), jnp.float32) * 0.1
    b1 = jnp.ones((2 * hidden_size,), jnp.float32)     # constant_(bias, 1.0)
    b2 = jnp.zeros((hidden_size,), jnp.float32)
    return (w1, w2, b1, b2)


# -----------------------------------------------------------------------------
# Pure-JAX reference (exact f32 semantics of the PyTorch module).
# -----------------------------------------------------------------------------
def _reference_forward_f32(x, edge_index, h, params):
    w1, w2, b1, b2 = params
    n, H = h.shape
    hp = jax.lax.Precision.HIGHEST
    adj = gcn_norm_dense(edge_index, n)
    z1 = jnp.concatenate([x, h], axis=1)
    ru = jax.nn.sigmoid(jnp.dot(adj, jnp.dot(z1, w1, precision=hp), precision=hp)
                        + b1[None, :])
    flat = ru.reshape(-1)                              # reshape(-1, n*2H) -> chunk(2)
    r = flat[: n * H].reshape(n, H)
    u = flat[n * H:].reshape(n, H)
    z2 = jnp.concatenate([x, r * h], axis=1)
    c = jnp.tanh(jnp.dot(adj, jnp.dot(z2, w2, precision=hp), precision=hp)
                 + b2[None, :])
    return u * h + (1.0 - u) * c


if __name__ == "__main__":
    # args.input_size doubles as num_nodes and per-node feature dim in the module.
    num_nodes = input_size = 16
    hidden_size = 32
    seq_len = 8

    key = jax.random.PRNGKey(0)
    kx, kh, kp = jax.random.split(key, 3)

    xs = jax.random.normal(kx, (seq_len, num_nodes, input_size), jnp.float32)
    h0 = jax.random.normal(kh, (num_nodes, hidden_size), jnp.float32)

    # Simple undirected ring graph: edge_index [2, 2*num_nodes].
    idx = jnp.arange(num_nodes, dtype=jnp.int32)
    nxt = (idx + 1) % num_nodes
    edge_index = jnp.stack(
        [jnp.concatenate([idx, nxt]), jnp.concatenate([nxt, idx])], axis=0)

    params = make_params(kp, input_size, hidden_size)
    # Hoisted per-sequence preprocessing (built once, reused by every call).
    ops = prepare_tgcn_operators(edge_index, num_nodes, hidden_size, params)

    step = jax.jit(tgcn_cell_forward)
    rollout = jax.jit(tgcn_rollout)

    # Single module-faithful step.
    new_h = jax.block_until_ready(step(xs[0], h0, ops))
    ref1 = _reference_forward_f32(xs[0], edge_index, h0, params)
    assert new_h.shape == (num_nodes, hidden_size)
    assert bool(jnp.all(jnp.isfinite(new_h)))
    assert float(jnp.max(jnp.abs(new_h - ref1))) < 2e-2

    # Fused T-step rollout: ONE pallas_call, h carried in VMEM the whole time.
    hseq = jax.block_until_ready(rollout(xs, h0, ops))
    assert hseq.shape == (seq_len, num_nodes, hidden_size)

    h_ref = h0
    for t in range(seq_len):
        h_ref = _reference_forward_f32(xs[t], edge_index, h_ref, params)
        assert float(jnp.max(jnp.abs(hseq[t] - h_ref))) < 5e-2

    print("KERNEL_OK")
</pallas_src>

<mosaic_0001>
module attributes {stable_mosaic.version = 11 : i64} {
  func.func @_tgcn_rollout_kernel(%arg0: i32, %arg1: memref<1x32x32xf32, #tpu.memory_space<vmem>>, %arg2: memref<1x16x32xf32, #tpu.memory_space<vmem>>, %arg3: memref<16x32xf32, #tpu.memory_space<vmem>>, %arg4: memref<32x32xf32, #tpu.memory_space<vmem>>, %arg5: memref<16x16xf32, #tpu.memory_space<vmem>>, %arg6: memref<32x32xf32, #tpu.memory_space<vmem>>, %arg7: memref<32x32xf32, #tpu.memory_space<vmem>>, %arg8: memref<32x32xf32, #tpu.memory_space<vmem>>, %arg9: memref<1x16x32xf32, #tpu.memory_space<vmem>>, %arg10: memref<16x32xf32, #tpu.memory_space<vmem>>, %arg11: memref<32x32xf32, #tpu.memory_space<vmem>>) attributes {dimension_semantics = [#tpu.dimension_semantics<arbitrary>], iteration_bounds = array<i64: 1>, scalar_prefetch = 0 : i64, scratch_operands = 2 : i64, tpu.core_type = #tpu.core_type<tc>, window_params = [{transform_indices = @transform_0, window_bounds = array<i64: 1, 32, 32>}, {transform_indices = @transform_1, window_bounds = array<i64: 1, 16, 32>}, {pipeline_mode = #tpu.pipeline_mode<synchronous>, transform_indices = @transform_2, window_bounds = array<i64: 16, 32>}, {pipeline_mode = #tpu.pipeline_mode<synchronous>, transform_indices = @transform_3, window_bounds = array<i64: 32, 32>}, {pipeline_mode = #tpu.pipeline_mode<synchronous>, transform_indices = @transform_4, window_bounds = array<i64: 16, 16>}, {pipeline_mode = #tpu.pipeline_mode<synchronous>, transform_indices = @transform_5, window_bounds = array<i64: 32, 32>}, {pipeline_mode = #tpu.pipeline_mode<synchronous>, transform_indices = @transform_6, window_bounds = array<i64: 32, 32>}, {pipeline_mode = #tpu.pipeline_mode<synchronous>, transform_indices = @transform_7, window_bounds = array<i64: 32, 32>}, {transform_indices = @transform_8, window_bounds = array<i64: 1, 16, 32>}]} {
    %c0_i32 = arith.constant 0 : i32
    %0 = arith.cmpi eq, %arg0, %c0_i32 : i32
    %1 = arith.extui %0 : i1 to i32
    %c0_i32_0 = arith.constant 0 : i32
    %2 = arith.cmpi ne, %1, %c0_i32_0 : i32
    scf.if %2 {
      %c0_34 = arith.constant 0 : index
      %c0_35 = arith.constant 0 : index
      %41 = vector.load %arg3[%c0_34, %c0_35] : memref<16x32xf32, #tpu.memory_space<vmem>>, vector<16x32xf32>
      %c0_36 = arith.constant 0 : index
      %c0_37 = arith.constant 0 : index
      %42 = vector.load %arg10[%c0_36, %c0_37] : memref<16x32xf32, #tpu.memory_space<vmem>>, vector<16x32xf32>
      tpu.vector_store %arg10[%c0_36, %c0_37], %41 {strides = array<i32>} : memref<16x32xf32, #tpu.memory_space<vmem>>, vector<16x32xf32>,
    } else {
    }
    %c0 = arith.constant 0 : index
    %c0_1 = arith.constant 0 : index
    %3 = vector.load %arg10[%c0, %c0_1] : memref<16x32xf32, #tpu.memory_space<vmem>>, vector<16x32xf32>
    %c0_2 = arith.constant 0 : index
    %c0_3 = arith.constant 0 : index
    %4 = vector.load %arg6[%c0_2, %c0_3] : memref<32x32xf32, #tpu.memory_space<vmem>>, vector<32x32xf32>
    %cst = arith.constant dense<0.000000e+00> : vector<16x32xf32>
    %5 = tpu.matmul %3, %4, %cst {dimension_numbers = #tpu.dot_dimension_numbers<[1], [0], [0], [1], [0, 0, 1, 1], [], []>} : vector<16x32xf32>, vector<32x32xf32>, vector<16x32xf32> -> vector<16x32xf32>
    %c0_4 = arith.constant 0 : index
    %c0_5 = arith.constant 0 : index
    %6 = vector.load %arg11[%c0_4, %c0_5] : memref<32x32xf32, #tpu.memory_space<vmem>>, vector<16x32xf32>
    tpu.vector_store %arg11[%c0_4, %c0_5], %5 {strides = array<i32>} : memref<32x32xf32, #tpu.memory_space<vmem>>, vector<16x32xf32>,
    %c0_6 = arith.constant 0 : index
    %c0_7 = arith.constant 0 : index
    %7 = vector.load %arg7[%c0_6, %c0_7] : memref<32x32xf32, #tpu.memory_space<vmem>>, vector<32x32xf32>
    %cst_8 = arith.constant dense<0.000000e+00> : vector<16x32xf32>
    %8 = tpu.matmul %3, %7, %cst_8 {dimension_numbers = #tpu.dot_dimension_numbers<[1], [0], [0], [1], [0, 0, 1, 1], [], []>} : vector<16x32xf32>, vector<32x32xf32>, vector<16x32xf32> -> vector<16x32xf32>
    %c16 = arith.constant 16 : index
    %c0_9 = arith.constant 0 : index
    %9 = vector.load %arg11[%c16, %c0_9] : memref<32x32xf32, #tpu.memory_space<vmem>>, vector<16x32xf32>
    tpu.vector_store %arg11[%c16, %c0_9], %8 {strides = array<i32>} : memref<32x32xf32, #tpu.memory_space<vmem>>, vector<16x32xf32>,
    %c0_10 = arith.constant 0 : index
    %c0_11 = arith.constant 0 : index
    %c0_12 = arith.constant 0 : index
    %10 = vector.load %arg1[%c0_10, %c0_11, %c0_12] : memref<1x32x32xf32, #tpu.memory_space<vmem>>, vector<1x32x32xf32>
    %11 = vector.shape_cast %10 : vector<1x32x32xf32> to vector<32x32xf32>
    %c0_13 = arith.constant 0 : index
    %c0_14 = arith.constant 0 : index
    %12 = vector.load %arg4[%c0_13, %c0_14] : memref<32x32xf32, #tpu.memory_space<vmem>>, vector<32x32xf32>
    %c0_15 = arith.constant 0 : index
    %c0_16 = arith.constant 0 : index
    %13 = vector.load %arg11[%c0_15, %c0_16] : memref<32x32xf32, #tpu.memory_space<vmem>>, vector<32x32xf32>
    %cst_17 = arith.constant dense<0.000000e+00> : vector<32x32xf32>
    %14 = tpu.matmul %12, %13, %cst_17 {dimension_numbers = #tpu.dot_dimension_numbers<[1], [0], [0], [1], [0, 0, 1, 1], [], []>} : vector<32x32xf32>, vector<32x32xf32>, vector<32x32xf32> -> vector<32x32xf32>
    %15 = arith.addf %11, %14 : vector<32x32xf32>
    %16 = arith.negf %15 : vector<32x32xf32>
    %17 = math.exp %16 : vector<32x32xf32>
    %cst_18 = arith.constant 1.000000e+00 : f32
    %18 = vector.broadcast %cst_18 : f32 to vector<32x32xf32>
    %19 = arith.addf %18, %17 : vector<32x32xf32>
    %20 = arith.divf %18, %19 : vector<32x32xf32>
    %21 = vector.extract_strided_slice %20 {offsets = [0, 0], sizes = [16, 32], strides = [1, 1]} : vector<32x32xf32> to vector<16x32xf32>
    %22 = vector.extract_strided_slice %20 {offsets = [16, 0], sizes = [16, 32], strides = [1, 1]} : vector<32x32xf32> to vector<16x32xf32>
    %23 = arith.mulf %21, %3 : vector<16x32xf32>
    %c0_19 = arith.constant 0 : index
    %c0_20 = arith.constant 0 : index
    %24 = vector.load %arg8[%c0_19, %c0_20] : memref<32x32xf32, #tpu.memory_space<vmem>>, vector<32x32xf32>
    %cst_21 = arith.constant dense<0.000000e+00> : vector<16x32xf32>
    %25 = tpu.matmul %23, %24, %cst_21 {dimension_numbers = #tpu.dot_dimension_numbers<[1], [0], [0], [1], [0, 0, 1, 1], [], []>} : vector<16x32xf32>, vector<32x32xf32>, vector<16x32xf32> -> vector<16x32xf32>
    %c0_22 = arith.constant 0 : index
    %c0_23 = arith.constant 0 : index
    %c0_24 = arith.constant 0 : index
    %26 = vector.load %arg2[%c0_22, %c0_23, %c0_24] : memref<1x16x32xf32, #tpu.memory_space<vmem>>, vector<1x16x32xf32>
    %27 = vector.shape_cast %26 : vector<1x16x32xf32> to vector<16x32xf32>
    %c0_25 = arith.constant 0 : index
    %c0_26 = arith.constant 0 : index
    %28 = vector.load %arg5[%c0_25, %c0_26] : memref<16x16xf32, #tpu.memory_space<vmem>>, vector<16x16xf32>
    %cst_27 = arith.constant dense<0.000000e+00> : vector<16x32xf32>
    %29 = tpu.matmul %28, %25, %cst_27 {dimension_numbers = #tpu.dot_dimension_numbers<[1], [0], [0], [1], [0, 0, 1, 1], [], []>} : vector<16x16xf32>, vector<16x32xf32>, vector<16x32xf32> -> vector<16x32xf32>
    %30 = arith.addf %27, %29 : vector<16x32xf32>
    %31 = math.tanh %30 : vector<16x32xf32>
    %32 = arith.mulf %22, %3 : vector<16x32xf32>
    %cst_28 = arith.constant 1.000000e+00 : f32
    %33 = vector.broadcast %cst_28 : f32 to vector<16x32xf32>
    %34 = arith.subf %33, %22 : vector<16x32xf32>
    %35 = arith.mulf %34, %31 : vector<16x32xf32>
    %36 = arith.addf %32, %35 : vector<16x32xf32>
    %c0_29 = arith.constant 0 : index
    %c0_30 = arith.constant 0 : index
    %37 = vector.load %arg10[%c0_29, %c0_30] : memref<16x32xf32, #tpu.memory_space<vmem>>, vector<16x32xf32>
    tpu.vector_store %arg10[%c0_29, %c0_30], %36 {strides = array<i32>} : memref<16x32xf32, #tpu.memory_space<vmem>>, vector<16x32xf32>,
    %c0_31 = arith.constant 0 : index
    %c0_32 = arith.constant 0 : index
    %c0_33 = arith.constant 0 : index
    %38 = vector.load %arg9[%c0_31, %c0_32, %c0_33] : memref<1x16x32xf32, #tpu.memory_space<vmem>>, vector<1x16x32xf32>
    %39 = vector.shape_cast %38 : vector<1x16x32xf32> to vector<16x32xf32>
    %40 = vector.shape_cast %36 : vector<16x32xf32> to vector<1x16x32xf32>
    tpu.vector_store %arg9[%c0_31, %c0_32, %c0_33], %40 {strides = array<i32>} : memref<1x16x32xf32, #tpu.memory_space<vmem>>, vector<1x16x32xf32>,
    return
  }
  func.func @transform_0(%arg0: i32) -> (i32, i32, i32) {
    %c0_i32 = arith.constant 0 : i32
    %c0_i32_0 = arith.constant 0 : i32
    %c0_i32_1 = arith.constant 0 : i32
    return %arg0, %c0_i32, %c0_i32_0 : i32, i32, i32
  }
  func.func @transform_1(%arg0: i32) -> (i32, i32, i32) {
    %c0_i32 = arith.constant 0 : i32
    %c0_i32_0 = arith.constant 0 : i32
    %c0_i32_1 = arith.constant 0 : i32
    return %arg0, %c0_i32, %c0_i32_0 : i32, i32, i32
  }
  func.func @transform_2(%arg0: i32) -> (i32, i32) {
    %c0_i32 = arith.constant 0 : i32
    %c0_i32_0 = arith.constant 0 : i32
    %c0_i32_1 = arith.constant 0 : i32
    return %c0_i32, %c0_i32_0 : i32, i32
  }
  func.func @transform_3(%arg0: i32) -> (i32, i32) {
    %c0_i32 = arith.constant 0 : i32
    %c0_i32_0 = arith.constant 0 : i32
    %c0_i32_1 = arith.constant 0 : i32
    return %c0_i32, %c0_i32_0 : i32, i32
  }
  func.func @transform_4(%arg0: i32) -> (i32, i32) {
    %c0_i32 = arith.constant 0 : i32
    %c0_i32_0 = arith.constant 0 : i32
    %c0_i32_1 = arith.constant 0 : i32
    return %c0_i32, %c0_i32_0 : i32, i32
  }
  func.func @transform_5(%arg0: i32) -> (i32, i32) {
    %c0_i32 = arith.constant 0 : i32
    %c0_i32_0 = arith.constant 0 : i32
    %c0_i32_1 = arith.constant 0 : i32
    return %c0_i32, %c0_i32_0 : i32, i32
  }
  func.func @transform_6(%arg0: i32) -> (i32, i32) {
    %c0_i32 = arith.constant 0 : i32
    %c0_i32_0 = arith.constant 0 : i32
    %c0_i32_1 = arith.constant 0 : i32
    return %c0_i32, %c0_i32_0 : i32, i32
  }
  func.func @transform_7(%arg0: i32) -> (i32, i32) {
    %c0_i32 = arith.constant 0 : i32
    %c0_i32_0 = arith.constant 0 : i32
    %c0_i32_1 = arith.constant 0 : i32
    return %c0_i32, %c0_i32_0 : i32, i32
  }
  func.func @transform_8(%arg0: i32) -> (i32, i32, i32) {
    %c0_i32 = arith.constant 0 : i32
    %c0_i32_0 = arith.constant 0 : i32
    %c0_i32_1 = arith.constant 0 : i32
    return %arg0, %c0_i32, %c0_i32_0 : i32, i32, i32
  }
}

</mosaic_0001>

<bundles_post_ra>
// kernel: tgcn_cell_forward.1
= control target key start
LH: loop header
LB: loop body
LE: loop exit
PB: predicated region body
PF: predicated region fallthrough
CT: control target
= control target key end

     0   :  { %vm36_vm0 = vcmask 261120   ;;  %s576_s0 = inlined_call_operand.vmem [shape: f32[1,32,32], index: 0, kind: input, shape index: {}]   ;;  %s577_s1 = inlined_call_operand.vmem [shape: f32[1,16,32], index: 1, kind: input, shape index: {}]   ;;  %s578_s2 = inlined_call_operand.vmem [shape: f32[16,32], index: 2, kind: input, shape index: {}]   ;;  %s579_s3 = inlined_call_operand.vmem [shape: f32[32,32], index: 3, kind: input, shape index: {}]   ;;  %s580_s4 = inlined_call_operand.vmem [shape: f32[16,16], index: 4, kind: input, shape index: {}]   ;;  %s581_s5 = inlined_call_operand.vmem [shape: f32[32,32], index: 5, kind: input, shape index: {}]   ;;  %s582_s6 = inlined_call_operand.vmem [shape: f32[32,32], index: 6, kind: input, shape index: {}]   ;;  %s583_s7 = inlined_call_operand.vmem [shape: f32[32,32], index: 7, kind: input, shape index: {}]   ;;  %s584_s8 = inlined_call_operand.hbm [shape: f32[1,16,32], index: 8, kind: output, shape index: {}]  }
   0x1   :  { %v44_v0 = vld [vmem:[%s581_s5 + $0x18] sm:$0xff]  ;;  %v43_v1 = vld [vmem:[%s581_s5 + $0x10] sm:$0xff]  ;;  %v35_v2 = vld [vmem:[%s578_s2 + $0x8] sm:$0xff] }
   0x2   :  { %358 = vmatpush.msra.mxu1 %v44_v0  ;;  %64 = vmatpush.msra.mxu0 %v44_v0  ;;  %v42_v3 = vld [vmem:[%s581_s5 + $0x8] sm:$0xff]  ;;  %38 = vst.msk [vmem:[#allocation2 + $0x8] sm:$0xff] %vm36_vm0, %v35_v2  ;;  %v34_v4 = vld [vmem:[%s578_s2] sm:$0xff] }
   0x4   :  { %359 = vmatpush.msra.mxu1 %v43_v1  ;;  %65 = vmatpush.msra.mxu0 %v43_v1 }
   0x5   :  { %13 = vsyncpa [#allocation5], 0  ;;  %v41_v5 = vld [vmem:[%s581_s5] sm:$0xff]  ;;  %37 = vst.msk [vmem:[#allocation2] sm:$0xff] %vm36_vm0, %v34_v4  ;;  %v80_v6 = vld [vmem:[%s582_s6 + $0x18] sm:$0xff]  ;;  %vm278_vm9 = vcmask 130048  }
   0x6   :  { %360 = vmatpush.msra.mxu1 %v42_v3  ;;  %66 = vmatpush.msra.mxu0 %v42_v3  ;;  %v79_v7 = vld [vmem:[%s582_s6 + $0x10] sm:$0xff]  ;;  %v78_v9 = vld [vmem:[%s582_s6 + $0x8] sm:$0xff]  ;;  %v77_v11 = vld [vmem:[%s582_s6] sm:$0xff]  ;;  %s330_s28 = sshll.u32 %s584_s8, 4  ;;  %s416_s29 = smov 128   ;;  %s331_s28 = int_to_ptr.hbm [resolvable:$true] %s330_s28 }
   0x7   :  { %v110_v20 = vld [vmem:[%s579_s3] sm:$0xff]  ;;  %v111_v21 = vld [vmem:[%s579_s3 + $0x8] sm:$0xff]  ;;  %v113_v22 = vld [vmem:[%s579_s3 + $0x18] sm:$0xff]  ;;  %s417_s30 = smov 8  }
   0x8   :  { %361 = vmatpush.msra.mxu1 %v41_v5  ;;  %67 = vmatpush.msra.mxu0 %v41_v5  ;;  %v244_v23 = vld [vmem:[%s583_s7 + $0x18] sm:$0xff]  ;;  %v243_v24 = vld [vmem:[%s583_s7 + $0x10] sm:$0xff]  ;;  %v242_v25 = vld [vmem:[%s583_s7 + $0x8] sm:$0xff] }
   0x9   :  { %v489_v8 = vld [vmem:[#allocation2 + $0x8] sm:$0xff]  ;;  %v241_v26 = vld [vmem:[%s583_s7] sm:$0xff]  ;;  %v112_v61 = vld [vmem:[%s579_s3 + $0x10] sm:$0xff] }
   0xa   :  { %93 = vmatpush.msrb.mxu1 %v80_v6  ;;  %v106_v27 = vld [vmem:[%s576_s0] sm:$0xff]  ;;  %v107_v31 = vld [vmem:[%s576_s0 + $0x8] sm:$0xff]  ;;  %v108_v3 = vld [vmem:[%s576_s0 + $0x10] sm:$0xff] }
   0xb   :  { %343 = vmatmul.msk.f32.vlgmr.msra.gmra.mxu1 %vm36_vm0, %v489_v8  ;;  %v276_v1 = vld [vmem:[%s580_s4] sm:$0xff]  ;;  %v277_v2 = vld [vmem:[%s580_s4 + $0x8] sm:$0xff] }
   0xc   :  { %94 = vmatpush.msrb.mxu1 %v79_v7  ;;  %v496_v10 = vld [vmem:[#allocation2] sm:$0xff]  ;;  %v109_v7 = vld [vmem:[%s576_s0 + $0x18] sm:$0xff] }
   0xd   :  { %342 = vmatmul.msk.f32.vlgmr.msra.gmra.mxu0 %vm36_vm0, %v496_v10 }
   0xe   :  { %95 = vmatpush.msrb.mxu1 %v78_v9 }
  0x10   :  { %96 = vmatpush.msrb.mxu1 %v77_v11 }
  0x13   :  { %344 = vmatmul.msk.f32.vlgmr.msrb.gmra.mxu1 %vm36_vm0, %v496_v10 }
  0x1b   :  { %345 = vmatmul.msk.f32.gmra.mxu1 %vm36_vm0, %v489_v8 }
  0x88   :  { %v72_v12 = vpop.f32.mrf.mxu1 }
  0x89   :  { %76 = vst.msk [vmem:[#allocation3 + $0x8] sm:$0xff] %vm36_vm0, %v72_v12 }
  0x8a   :  { %v69_v13 = vpop.f32.mrf.mxu0 }
  0x8b   :  { %75 = vst.msk [vmem:[#allocation3] sm:$0xff] %vm36_vm0, %v69_v13 }
  0x90   :  { %v98_v14 = vpop.f32.mrf.mxu1  ;;  %v115_v18 = vld [vmem:[#allocation3 + $0x8] sm:$0xff] }
  0x91   :  { %104 = vst.msk [vmem:[#allocation3 + $0x10] sm:$0xff] %vm36_vm0, %v98_v14 }
  0x92   :  { %v114_v19 = vld [vmem:[#allocation3] sm:$0xff] }
  0x98   :  { %v101_v15 = vpop.f32.mrf.mxu1  ;;  %v116_v17 = vld [vmem:[#allocation3 + $0x10] sm:$0xff] }
  0x99   :  { %105 = vst.msk [vmem:[#allocation3 + $0x18] sm:$0xff] %vm36_vm0, %v101_v15 }
  0xa0   :  { %v117_v16 = vld [vmem:[#allocation3 + $0x18] sm:$0xff] }
  0xa1   :  { %142 = vmatpush.msra.mxu2 %v117_v16  ;;  %362 = vmatpush.msra.mxu3 %v117_v16 }
  0xa3   :  { %143 = vmatpush.msra.mxu2 %v116_v17  ;;  %363 = vmatpush.msra.mxu3 %v116_v17 }
  0xa5   :  { %144 = vmatpush.msra.mxu2 %v115_v18  ;;  %364 = vmatpush.msra.mxu3 %v115_v18 }
  0xa7   :  { %145 = vmatpush.msra.mxu2 %v114_v19  ;;  %365 = vmatpush.msra.mxu3 %v114_v19 }
  0xa8   :  { %346 = vmatmul.msk.f32.vlgmr.msra.gmra.mxu2 %vm36_vm0, %v110_v20  ;;  %349 = vmatmul.msk.f32.vlgmr.msra.gmra.mxu3 %vm36_vm0, %v113_v22 }
  0xa9   :  { %263 = vmatpush.msrb.mxu3 %v244_v23 }
  0xab   :  { %264 = vmatpush.msrb.mxu3 %v243_v24 }
  0xad   :  { %265 = vmatpush.msrb.mxu3 %v242_v25 }
  0xaf   :  { %266 = vmatpush.msrb.mxu3 %v241_v26  ;;  %v274_v26 = vld [vmem:[%s577_s1] sm:$0xff] }
  0xb0   :  { %347 = vmatmul.msk.f32.gmra.mxu2 %vm36_vm0, %v111_v21 }
  0xb8   :  { %348 = vmatmul.msk.f32.gmra.mxu2 %vm36_vm0, %v112_v61 }
 0x12b   :  { %v147_v28 = vpop.f32.mrf.mxu2  ;;  %v156_v62 = vpop.f32.mrf.mxu3 }
 0x12c   :  { %v159_v29 = vadd.f32 %v147_v28, %v106_v27  ;;  %v162_v9 = vadd.f32 %v156_v62, %v109_v7 }
 0x12e   :  { %v350_v30 = vmul.f32 -1.442695, %v159_v29  ;;  %v353_v11 = vmul.f32 -1.442695, %v162_v9 }
 0x130   :  { %369 = vpow2.f32 %v350_v30 }
 0x133   :  { %v150_v32 = vpop.f32.mrf.mxu2 }
 0x134   :  { %v160_v33 = vadd.f32 %v150_v32, %v107_v31 }
 0x136   :  { %v370_v34 = vpop.eup %369  ;;  %v351_v35 = vmul.f32 -1.442695, %v160_v33 }
 0x137   :  { %v175_v36 = vadd.f32 1.0, %v370_v34 }
 0x138   :  { %371 = vpow2.f32 %v351_v35 }
 0x139   :  { %373 = vrcp.f32 %v175_v36  ;;  %v190_v42 = vand.u32 2147483648, %v175_v36  ;;  %v188_v44 = vand.u32 2147483647, %v175_v36  ;;  %vm184_vm2 = vweird.f32 %v175_v36 }
 0x13b   :  { %v191_v47 = vor.u32 1.1754944e-38, %v190_v42  ;;  %vm189_vm4 = vcmp.eq.f32.partialorder %v188_v44, 8.507059e+37  ;;  %v153_v4 = vpop.f32.mrf.mxu2 }
 0x13c   :  { %v161_v5 = vadd.f32 %v153_v4, %v108_v3 }
 0x13e   :  { %v372_v37 = vpop.eup %371  ;;  %v352_v6 = vmul.f32 -1.442695, %v161_v5 }
 0x13f   :  { %v374_v38 = vpop.eup %373  ;;  %v176_v39 = vadd.f32 1.0, %v372_v37 }
 0x140   :  { %v180_v40 = vmul.f32 %v374_v38, %v175_v36  ;;  %vm185_vm1 = vweird.f32 %v374_v38  ;;  %v275_v36 = vld [vmem:[%s577_s1 + $0x8] sm:$0xff]  ;;  %s415_s1 = smov [#allocation4]  }
 0x141   :  { %375 = vrcp.f32 %v176_v39  ;;  %vm186_vm3 = vmor %vm184_vm2, %vm185_vm1  ;;  %v205_v53 = vand.u32 2147483648, %v176_v39  ;;  %v203_v55 = vand.u32 2147483647, %v176_v39  ;;  %vm199_vm6 = vweird.f32 %v176_v39  ;;  %s328_s25 = sshll.u32 %s415_s1, 4  ;;  %s329_s25 = int_to_ptr.vmem [resolvable:$true] %s328_s25 }
 0x142   :  { %v181_v41 = vsub.f32 1.0, %v180_v40  ;;  %377 = vpow2.f32 %v352_v6 }
 0x143   :  { %v206_v57 = vor.u32 1.1754944e-38, %v205_v53  ;;  %vm204_vm8 = vcmp.eq.f32.partialorder %v203_v55, 8.507059e+37  ;;  %379 = vpow2.f32 %v353_v11 }
 0x144   :  { %v182_v43 = vmul.f32 %v374_v38, %v181_v41 }
 0x146   :  { %v183_v45 = vadd.f32 %v374_v38, %v182_v43 }
 0x147   :  { %v376_v46 = vpop.eup %375 }
 0x148   :  { %v195_v48 = vmul.f32 %v376_v46, %v176_v39  ;;  %v187_v49 = vsel %vm186_vm3, %v374_v38, %v183_v45  ;;  %vm200_vm5 = vweird.f32 %v376_v46  ;;  %v378_v12 = vpop.eup %377 }
 0x149   :  { %v192_v50 = vsel %vm189_vm4, %v191_v47, %v187_v49  ;;  %vm201_vm7 = vmor %vm199_vm6, %vm200_vm5  ;;  %v177_v13 = vadd.f32 1.0, %v378_v12  ;;  %v380_v14 = vpop.eup %379 }
 0x14a   :  { %v239_v51 = vmul.f32 %v192_v50, %v496_v10  ;;  %v196_v52 = vsub.f32 1.0, %v195_v48  ;;  %v178_v15 = vadd.f32 1.0, %v380_v14 }
 0x14b   :  { %381 = vrcp.f32 %v177_v13  ;;  %vm214_vm10 = vweird.f32 %v177_v13  ;;  %v220_v22 = vand.u32 2147483648, %v177_v13  ;;  %v218_v25 = vand.u32 2147483647, %v177_v13 }
 0x14c   :  { %354 = vmatmul.msk.f32.vlgmr.msrb.gmra.mxu3 %vm36_vm0, %v239_v51  ;;  %v197_v54 = vmul.f32 %v376_v46, %v196_v52  ;;  %383 = vrcp.f32 %v178_v15  ;;  %vm229_vm14 = vweird.f32 %v178_v15  ;;  %v235_v32 = vand.u32 2147483648, %v178_v15 }
 0x14d   :  { %v221_v28 = vor.u32 1.1754944e-38, %v220_v22  ;;  %vm219_vm13 = vcmp.eq.f32.partialorder %v218_v25, 8.507059e+37  ;;  %v233_v35 = vand.u32 2147483647, %v178_v15 }
 0x14e   :  { %v198_v56 = vadd.f32 %v376_v46, %v197_v54  ;;  %v236_v40 = vor.u32 1.1754944e-38, %v235_v32 }
 0x14f   :  { %vm234_vm2 = vcmp.eq.f32.partialorder %v233_v35, 8.507059e+37 }
 0x150   :  { %v202_v58 = vsel %vm201_vm7, %v376_v46, %v198_v56 }
 0x151   :  { %v207_v59 = vsel %vm204_vm8, %v206_v57, %v202_v58  ;;  %v382_v16 = vpop.eup %381 }
 0x152   :  { %v240_v60 = vmul.f32 %v207_v59, %v489_v8  ;;  %v210_v17 = vmul.f32 %v382_v16, %v177_v13  ;;  %v384_v19 = vpop.eup %383  ;;  %vm215_vm11 = vweird.f32 %v382_v16 }
 0x153   :  { %v225_v20 = vmul.f32 %v384_v19, %v178_v15  ;;  %vm216_vm12 = vmor %vm214_vm10, %vm215_vm11  ;;  %vm230_vm15 = vweird.f32 %v384_v19 }
 0x154   :  { %355 = vmatmul.msk.f32.gmra.mxu3 %vm36_vm0, %v240_v60  ;;  %v211_v18 = vsub.f32 1.0, %v210_v17  ;;  %vm231_vm1 = vmor %vm229_vm14, %vm230_vm15 }
 0x155   :  { %v226_v23 = vsub.f32 1.0, %v225_v20 }
 0x156   :  { %v212_v21 = vmul.f32 %v382_v16, %v211_v18 }
 0x157   :  { %v227_v30 = vmul.f32 %v384_v19, %v226_v23 }
 0x158   :  { %v213_v24 = vadd.f32 %v382_v16, %v212_v21 }
 0x159   :  { %v228_v34 = vadd.f32 %v384_v19, %v227_v30 }
 0x15a   :  { %v217_v31 = vsel %vm216_vm12, %v382_v16, %v213_v24 }
 0x15b   :  { %v222_v33 = vsel %vm219_vm13, %v221_v28, %v217_v31  ;;  %v232_v44 = vsel %vm231_vm1, %v384_v19, %v228_v34 }
 0x15c   :  { %v314_v37 = vsub.f32 1.0, %v222_v33  ;;  %v312_v42 = vmul.f32 %v222_v33, %v496_v10  ;;  %v237_v46 = vsel %vm234_vm2, %v236_v40, %v232_v44 }
 0x15d   :  { %v315_v47 = vsub.f32 1.0, %v237_v46  ;;  %v313_v10 = vmul.f32 %v237_v46, %v489_v8 }
 0x1cf   :  { %v268_v63 = vpop.f32.mrf.mxu3 }
 0x1d7   :  { %v271_v0 = vpop.f32.mrf.mxu3 }
 0x1d8   :  { %299 = vmatpush.msrb.mxu0 %v271_v0 }
 0x1da   :  { %300 = vmatpush.msrb.mxu0 %v268_v63 }
 0x1db   :  { %356 = vmatmul.msk.f32.vlgmr.msrb.gmra.mxu0 %vm278_vm9, %v276_v1 }
 0x1e3   :  { %357 = vmatmul.msk.f32.gmra.mxu0 %vm278_vm9, %v277_v2 }
 0x258   :  { %v302_v27 = vpop.f32.mrf.mxu0 }
 0x259   :  { %v308_v29 = vadd.f32 %v302_v27, %v274_v26 }
 0x25b   :  { %385 = vtanh.f32 %v308_v29 }
 0x260   :  { %v305_v38 = vpop.f32.mrf.mxu0 }
 0x261   :  { %v386_v39 = vpop.eup %385  ;;  %v309_v41 = vadd.f32 %v305_v38, %v275_v36 }
 0x262   :  { %v316_v43 = vmul.f32 %v386_v39, %v314_v37 }
 0x263   :  { %387 = vtanh.f32 %v309_v41 }
 0x264   :  { %v318_v45 = vadd.f32 %v316_v43, %v312_v42 }
 0x266   :  { %320 = vst.msk [vmem:[#allocation2] sm:$0xff] %vm36_vm0, %v318_v45 }
 0x267   :  { %322 = vst.msk [vmem:[#allocation4] sm:$0xff] %vm36_vm0, %v318_v45 }
 0x269   :  { %v388_v48 = vpop.eup %387 }
 0x26a   :  { %v317_v49 = vmul.f32 %v388_v48, %v315_v47 }
 0x26c   :  { %v319_v50 = vadd.f32 %v317_v49, %v313_v10 }
 0x26e   :  { %321 = vst.msk [vmem:[#allocation2 + $0x8] sm:$0xff] %vm36_vm0, %v319_v50 }
 0x26f   :  { %323 = vst.msk [vmem:[#allocation4 + $0x8] sm:$0xff] %vm36_vm0, %v319_v50 }
 0x270   :  { %336 = dma.vmem_to_hbm [thread:$0]  %s329_s25, 256, %s331_s28, [#allocation5], %s416_s29, %s416_s29, %s417_s30  }
 0x271   :  { %413 = dma.done.wait [#allocation5], 256  }
 0x272   :  { %414 = vsyncadd [#allocation5], 4294967040 }
 0x273   :  { %341 = vsyncpa [#allocation5], 1 }

</bundles_post_ra>
